<compile_context>
chip_gen: v5e
topology: v5e:2x2
jax: 0.10.0
libtpu: 0.0.40
codegen_flags: <defaults>
</compile_context>

<pallas_src>
import numpy as np
import jax
import jax.numpy as jnp
from jax.experimental import pallas as pl
from jax.experimental.pallas import tpu as pltpu

STRIDE = 3
KSIZE = 3
PAD = 1


def _conv_out(n):
    return (n + 2 * PAD - KSIZE) // STRIDE + 1


def _row_gather(n_batch, h_in, h_out):
    """(K, N*h_out, N*h_in) 0/1 matrices selecting input row oh*stride+kh-pad.

    Out-of-range rows (the zero padding in H) become all-zero rows."""
    r = np.zeros((KSIZE, n_batch * h_out, n_batch * h_in), np.float32)
    for kh in range(KSIZE):
        for n in range(n_batch):
            for oh in range(h_out):
                h = oh * STRIDE + kh - PAD
                if 0 <= h < h_in:
                    r[kh, n * h_out + oh, n * h_in + h] = 1.0
    return r


def _col_weights(w_hwio, w_in, w_out):
    """Expand HWIO conv weights to (K, w_in*Cin, w_out*Cout) block matrices.

    (row-gathered input) @ result performs the horizontal taps; padding in W is
    encoded by the missing (zero) blocks."""
    w = np.asarray(jax.device_get(w_hwio), np.float32)
    kh_, kw_, cin, cout = w.shape
    out = np.zeros((kh_, w_in * cin, w_out * cout), np.float32)
    for kh in range(kh_):
        for ow in range(w_out):
            for kw in range(kw_):
                wi = ow * STRIDE + kw - PAD
                if 0 <= wi < w_in:
                    out[kh, wi * cin:(wi + 1) * cin,
                        ow * cout:(ow + 1) * cout] = w[kh, kw]
    return out


def prepare_params(params, n_batch, h, w):
    """One-time weight preprocessing (outside the jitted forward)."""
    cin = params["w1"].shape[2]
    cmid = params["w1"].shape[3]
    cout = params["w2"].shape[3]
    oh1, ow1 = _conv_out(h), _conv_out(w)
    oh2, ow2 = _conv_out(oh1), _conv_out(ow1)

    r1 = _row_gather(n_batch, h, oh1)            # (3, N*OH1, N*H)
    r2 = _row_gather(n_batch, oh1, oh2)          # (3, N*OH2, N*OH1)
    w1b = _col_weights(params["w1"], w, ow1)     # (3, W*Cin,    OW1*Cmid)
    w2b = _col_weights(params["w2"], ow1, ow2)   # (3, OW1*Cmid, OW2*Cout)

    b1 = np.asarray(jax.device_get(params["b1"]), np.float32)
    b2 = np.asarray(jax.device_get(params["b2"]), np.float32)

    # Fold BOTH biases into a single output-bias term: conv2 is linear, and its
    # zero padding is already encoded by the zero rows/blocks of r2 / w2b.
    b1_full = np.broadcast_to(np.tile(b1, ow1), (n_batch * oh1, ow1 * cmid))
    out_bias = np.broadcast_to(np.tile(b2, ow2),
                               (n_batch * oh2, ow2 * cout)).copy()
    for kh in range(KSIZE):
        out_bias += (r2[kh] @ b1_full) @ w2b[kh]

    return {
        "r1": jnp.asarray(r1), "w1b": jnp.asarray(w1b),
        "r2": jnp.asarray(r2), "w2b": jnp.asarray(w2b),
        "out_bias": jnp.asarray(out_bias),
        "dims": (cin, cmid, cout, oh1, ow1, oh2, ow2),
    }


def _fused_conv_leaky_kernel(x_ref, r1_ref, w1b_ref, r2_ref, w2b_ref,
                             bias_ref, slope_ref, o_ref):
    x = x_ref[...]                                 # (N*H, W*Cin), lane-dense

    # conv1 (bias folded into bias_ref): v1[(n*OH1+r), c*Cmid+ci]
    v1 = None
    for kh in range(r1_ref.shape[0]):
        y = jnp.dot(r1_ref[kh], x, preferred_element_type=jnp.float32)
        t = jnp.dot(y, w1b_ref[kh], preferred_element_type=jnp.float32)
        v1 = t if v1 is None else v1 + t

    # conv2 + (both) biases
    out = bias_ref[...]                            # (N*OH2, OW2*Cout)
    for kh in range(r2_ref.shape[0]):
        y = jnp.dot(r2_ref[kh], v1, preferred_element_type=jnp.float32)
        out = out + jnp.dot(y, w2b_ref[kh], preferred_element_type=jnp.float32)

    # fused where(v2 > 0, v2, v2 * negative_slope)
    slope = slope_ref[...]                         # (1, 1), broadcasts
    o_ref[...] = jnp.where(out > 0, out, out * slope)


def make_forward(params, x_shape):
    n_batch, cin, h, w = x_shape
    prepped = prepare_params(params, n_batch, h, w)
    _, _, cout, _, _, oh2, ow2 = prepped["dims"]

    call_kwargs = dict(
        out_shape=jax.ShapeDtypeStruct((n_batch * oh2, ow2 * cout), jnp.float32),
        in_specs=[pl.BlockSpec(memory_space=pltpu.MemorySpace.VMEM)
                  for _ in range(7)],
        out_specs=pl.BlockSpec(memory_space=pltpu.MemorySpace.VMEM),
        cost_estimate=pl.CostEstimate(flops=800_000, transcendentals=0,
                                      bytes_accessed=110_000),
    )

    @jax.jit
    def forward(x_nchw, negative_slope=1.0):
        # NCHW -> lane-dense (N*H, W*C) slab (single small XLA transpose-copy).
        x2d = jnp.transpose(x_nchw, (0, 2, 3, 1)).reshape(n_batch * h, w * cin)
        slope = jnp.full((1, 1), negative_slope, jnp.float32)
        out2d = pl.pallas_call(_fused_conv_leaky_kernel, **call_kwargs)(
            x2d, prepped["r1"], prepped["w1b"], prepped["r2"], prepped["w2b"],
            prepped["out_bias"], slope)
        # (N*OH2, OW2*Cout) -> NCHW (256 B).
        return out2d.reshape(n_batch, oh2, ow2, cout).transpose(0, 3, 1, 2)

    return forward


def init_params(key, cin=8, cout=8, k=3):
    k1, k2, k3, k4 = jax.random.split(key, 4)
    fan_in = cin * k * k
    bound = 1.0 / float(np.sqrt(fan_in))
    # HWIO layout for weights (deterministic synthetic init).
    w1 = jax.random.uniform(k1, (k, k, cin, cout), jnp.float32, -bound, bound)
    b1 = jax.random.uniform(k2, (cout,), jnp.float32, -bound, bound)
    w2 = jax.random.uniform(k3, (k, k, cout, cout), jnp.float32, -bound, bound)
    b2 = jax.random.uniform(k4, (cout,), jnp.float32, -bound, bound)
    return {"w1": w1, "b1": b1, "w2": w2, "b2": b2}


def reference_forward(x_nchw, params, negative_slope=1.0):
    """Pure-JAX reference matching the PyTorch module."""
    dn = ("NCHW", "HWIO", "NCHW")
    y = jax.lax.conv_general_dilated(x_nchw, params["w1"], (STRIDE, STRIDE),
                                     ((PAD, PAD), (PAD, PAD)),
                                     dimension_numbers=dn)
    y = y + params["b1"].reshape(1, -1, 1, 1)
    y = jax.lax.conv_general_dilated(y, params["w2"], (STRIDE, STRIDE),
                                     ((PAD, PAD), (PAD, PAD)),
                                     dimension_numbers=dn)
    y = y + params["b2"].reshape(1, -1, 1, 1)
    return jnp.where(y > 0, y, y * negative_slope)


if __name__ == "__main__":
    key = jax.random.PRNGKey(0)
    kx, kp = jax.random.split(key)

    # Input: batch=2, channels=8 (required by conv1), spatial=16x16, NCHW.
    x = jax.random.normal(kx, (2, 8, 16, 16), jnp.float32)
    params = init_params(kp)

    forward = make_forward(params, x.shape)

    out = forward(x)                       # negative_slope = 1 (module default)
    jax.block_until_ready(out)
    assert out.shape == (2, 8, 2, 2), out.shape

    ref = reference_forward(x, params)
    np.testing.assert_allclose(np.asarray(out), np.asarray(ref),
                               rtol=2e-2, atol=2e-2)

    out2 = forward(x, negative_slope=0.2)  # exercise the fused `where` epilogue
    jax.block_until_ready(out2)
    ref2 = reference_forward(x, params, 0.2)
    np.testing.assert_allclose(np.asarray(out2), np.asarray(ref2),
                               rtol=2e-2, atol=2e-2)

    print("KERNEL_OK")
</pallas_src>

<mosaic_0001>
module attributes {stable_mosaic.version = 11 : i64} {
  func.func @_fused_conv_leaky_kernel(%arg0: memref<32x128xf32, #tpu.memory_space<vmem>>, %arg1: memref<3x12x32xf32, #tpu.memory_space<vmem>>, %arg2: memref<3x128x48xf32, #tpu.memory_space<vmem>>, %arg3: memref<3x4x12xf32, #tpu.memory_space<vmem>>, %arg4: memref<3x48x16xf32, #tpu.memory_space<vmem>>, %arg5: memref<4x16xf32, #tpu.memory_space<vmem>>, %arg6: memref<1x1xf32, #tpu.memory_space<vmem>>, %arg7: memref<4x16xf32, #tpu.memory_space<vmem>>) attributes {dimension_semantics = [], scalar_prefetch = 0 : i64, scratch_operands = 0 : i64, tpu.core_type = #tpu.core_type<tc>} {
    %c0 = arith.constant 0 : index
    %c0_0 = arith.constant 0 : index
    %0 = vector.load %arg0[%c0, %c0_0] : memref<32x128xf32, #tpu.memory_space<vmem>>, vector<32x128xf32>
    %c0_1 = arith.constant 0 : index
    %c0_2 = arith.constant 0 : index
    %c0_3 = arith.constant 0 : index
    %1 = vector.load %arg1[%c0_1, %c0_2, %c0_3] : memref<3x12x32xf32, #tpu.memory_space<vmem>>, vector<1x12x32xf32>
    %2 = vector.shape_cast %1 : vector<1x12x32xf32> to vector<12x32xf32>
    %cst = arith.constant dense<0.000000e+00> : vector<12x128xf32>
    %3 = tpu.matmul %2, %0, %cst {dimension_numbers = #tpu.dot_dimension_numbers<[1], [0], [0], [1], [0, 0, 1, 1], [], []>} : vector<12x32xf32>, vector<32x128xf32>, vector<12x128xf32> -> vector<12x128xf32>
    %c0_4 = arith.constant 0 : index
    %c0_5 = arith.constant 0 : index
    %c0_6 = arith.constant 0 : index
    %4 = vector.load %arg2[%c0_4, %c0_5, %c0_6] : memref<3x128x48xf32, #tpu.memory_space<vmem>>, vector<1x128x48xf32>
    %5 = vector.shape_cast %4 : vector<1x128x48xf32> to vector<128x48xf32>
    %cst_7 = arith.constant dense<0.000000e+00> : vector<12x48xf32>
    %6 = tpu.matmul %3, %5, %cst_7 {dimension_numbers = #tpu.dot_dimension_numbers<[1], [0], [0], [1], [0, 0, 1, 1], [], []>} : vector<12x128xf32>, vector<128x48xf32>, vector<12x48xf32> -> vector<12x48xf32>
    %c1 = arith.constant 1 : index
    %c0_8 = arith.constant 0 : index
    %c0_9 = arith.constant 0 : index
    %7 = vector.load %arg1[%c1, %c0_8, %c0_9] : memref<3x12x32xf32, #tpu.memory_space<vmem>>, vector<1x12x32xf32>
    %8 = vector.shape_cast %7 : vector<1x12x32xf32> to vector<12x32xf32>
    %cst_10 = arith.constant dense<0.000000e+00> : vector<12x128xf32>
    %9 = tpu.matmul %8, %0, %cst_10 {dimension_numbers = #tpu.dot_dimension_numbers<[1], [0], [0], [1], [0, 0, 1, 1], [], []>} : vector<12x32xf32>, vector<32x128xf32>, vector<12x128xf32> -> vector<12x128xf32>
    %c1_11 = arith.constant 1 : index
    %c0_12 = arith.constant 0 : index
    %c0_13 = arith.constant 0 : index
    %10 = vector.load %arg2[%c1_11, %c0_12, %c0_13] : memref<3x128x48xf32, #tpu.memory_space<vmem>>, vector<1x128x48xf32>
    %11 = vector.shape_cast %10 : vector<1x128x48xf32> to vector<128x48xf32>
    %cst_14 = arith.constant dense<0.000000e+00> : vector<12x48xf32>
    %12 = tpu.matmul %9, %11, %cst_14 {dimension_numbers = #tpu.dot_dimension_numbers<[1], [0], [0], [1], [0, 0, 1, 1], [], []>} : vector<12x128xf32>, vector<128x48xf32>, vector<12x48xf32> -> vector<12x48xf32>
    %13 = arith.addf %6, %12 : vector<12x48xf32>
    %c2 = arith.constant 2 : index
    %c0_15 = arith.constant 0 : index
    %c0_16 = arith.constant 0 : index
    %14 = vector.load %arg1[%c2, %c0_15, %c0_16] : memref<3x12x32xf32, #tpu.memory_space<vmem>>, vector<1x12x32xf32>
    %15 = vector.shape_cast %14 : vector<1x12x32xf32> to vector<12x32xf32>
    %cst_17 = arith.constant dense<0.000000e+00> : vector<12x128xf32>
    %16 = tpu.matmul %15, %0, %cst_17 {dimension_numbers = #tpu.dot_dimension_numbers<[1], [0], [0], [1], [0, 0, 1, 1], [], []>} : vector<12x32xf32>, vector<32x128xf32>, vector<12x128xf32> -> vector<12x128xf32>
    %c2_18 = arith.constant 2 : index
    %c0_19 = arith.constant 0 : index
    %c0_20 = arith.constant 0 : index
    %17 = vector.load %arg2[%c2_18, %c0_19, %c0_20] : memref<3x128x48xf32, #tpu.memory_space<vmem>>, vector<1x128x48xf32>
    %18 = vector.shape_cast %17 : vector<1x128x48xf32> to vector<128x48xf32>
    %cst_21 = arith.constant dense<0.000000e+00> : vector<12x48xf32>
    %19 = tpu.matmul %16, %18, %cst_21 {dimension_numbers = #tpu.dot_dimension_numbers<[1], [0], [0], [1], [0, 0, 1, 1], [], []>} : vector<12x128xf32>, vector<128x48xf32>, vector<12x48xf32> -> vector<12x48xf32>
    %20 = arith.addf %13, %19 : vector<12x48xf32>
    %c0_22 = arith.constant 0 : index
    %c0_23 = arith.constant 0 : index
    %21 = vector.load %arg5[%c0_22, %c0_23] : memref<4x16xf32, #tpu.memory_space<vmem>>, vector<4x16xf32>
    %c0_24 = arith.constant 0 : index
    %c0_25 = arith.constant 0 : index
    %c0_26 = arith.constant 0 : index
    %22 = vector.load %arg3[%c0_24, %c0_25, %c0_26] : memref<3x4x12xf32, #tpu.memory_space<vmem>>, vector<1x4x12xf32>
    %23 = vector.shape_cast %22 : vector<1x4x12xf32> to vector<4x12xf32>
    %cst_27 = arith.constant dense<0.000000e+00> : vector<4x48xf32>
    %24 = tpu.matmul %23, %20, %cst_27 {dimension_numbers = #tpu.dot_dimension_numbers<[1], [0], [0], [1], [0, 0, 1, 1], [], []>} : vector<4x12xf32>, vector<12x48xf32>, vector<4x48xf32> -> vector<4x48xf32>
    %c0_28 = arith.constant 0 : index
    %c0_29 = arith.constant 0 : index
    %c0_30 = arith.constant 0 : index
    %25 = vector.load %arg4[%c0_28, %c0_29, %c0_30] : memref<3x48x16xf32, #tpu.memory_space<vmem>>, vector<1x48x16xf32>
    %26 = vector.shape_cast %25 : vector<1x48x16xf32> to vector<48x16xf32>
    %cst_31 = arith.constant dense<0.000000e+00> : vector<4x16xf32>
    %27 = tpu.matmul %24, %26, %cst_31 {dimension_numbers = #tpu.dot_dimension_numbers<[1], [0], [0], [1], [0, 0, 1, 1], [], []>} : vector<4x48xf32>, vector<48x16xf32>, vector<4x16xf32> -> vector<4x16xf32>
    %28 = arith.addf %21, %27 : vector<4x16xf32>
    %c1_32 = arith.constant 1 : index
    %c0_33 = arith.constant 0 : index
    %c0_34 = arith.constant 0 : index
    %29 = vector.load %arg3[%c1_32, %c0_33, %c0_34] : memref<3x4x12xf32, #tpu.memory_space<vmem>>, vector<1x4x12xf32>
    %30 = vector.shape_cast %29 : vector<1x4x12xf32> to vector<4x12xf32>
    %cst_35 = arith.constant dense<0.000000e+00> : vector<4x48xf32>
    %31 = tpu.matmul %30, %20, %cst_35 {dimension_numbers = #tpu.dot_dimension_numbers<[1], [0], [0], [1], [0, 0, 1, 1], [], []>} : vector<4x12xf32>, vector<12x48xf32>, vector<4x48xf32> -> vector<4x48xf32>
    %c1_36 = arith.constant 1 : index
    %c0_37 = arith.constant 0 : index
    %c0_38 = arith.constant 0 : index
    %32 = vector.load %arg4[%c1_36, %c0_37, %c0_38] : memref<3x48x16xf32, #tpu.memory_space<vmem>>, vector<1x48x16xf32>
    %33 = vector.shape_cast %32 : vector<1x48x16xf32> to vector<48x16xf32>
    %cst_39 = arith.constant dense<0.000000e+00> : vector<4x16xf32>
    %34 = tpu.matmul %31, %33, %cst_39 {dimension_numbers = #tpu.dot_dimension_numbers<[1], [0], [0], [1], [0, 0, 1, 1], [], []>} : vector<4x48xf32>, vector<48x16xf32>, vector<4x16xf32> -> vector<4x16xf32>
    %35 = arith.addf %28, %34 : vector<4x16xf32>
    %c2_40 = arith.constant 2 : index
    %c0_41 = arith.constant 0 : index
    %c0_42 = arith.constant 0 : index
    %36 = vector.load %arg3[%c2_40, %c0_41, %c0_42] : memref<3x4x12xf32, #tpu.memory_space<vmem>>, vector<1x4x12xf32>
    %37 = vector.shape_cast %36 : vector<1x4x12xf32> to vector<4x12xf32>
    %cst_43 = arith.constant dense<0.000000e+00> : vector<4x48xf32>
    %38 = tpu.matmul %37, %20, %cst_43 {dimension_numbers = #tpu.dot_dimension_numbers<[1], [0], [0], [1], [0, 0, 1, 1], [], []>} : vector<4x12xf32>, vector<12x48xf32>, vector<4x48xf32> -> vector<4x48xf32>
    %c2_44 = arith.constant 2 : index
    %c0_45 = arith.constant 0 : index
    %c0_46 = arith.constant 0 : index
    %39 = vector.load %arg4[%c2_44, %c0_45, %c0_46] : memref<3x48x16xf32, #tpu.memory_space<vmem>>, vector<1x48x16xf32>
    %40 = vector.shape_cast %39 : vector<1x48x16xf32> to vector<48x16xf32>
    %cst_47 = arith.constant dense<0.000000e+00> : vector<4x16xf32>
    %41 = tpu.matmul %38, %40, %cst_47 {dimension_numbers = #tpu.dot_dimension_numbers<[1], [0], [0], [1], [0, 0, 1, 1], [], []>} : vector<4x48xf32>, vector<48x16xf32>, vector<4x16xf32> -> vector<4x16xf32>
    %42 = arith.addf %35, %41 : vector<4x16xf32>
    %c0_48 = arith.constant 0 : index
    %c0_49 = arith.constant 0 : index
    %43 = vector.load %arg6[%c0_48, %c0_49] : memref<1x1xf32, #tpu.memory_space<vmem>>, vector<1x1xf32>
    %cst_50 = arith.constant 0.000000e+00 : f32
    %44 = vector.broadcast %cst_50 : f32 to vector<4x16xf32>
    %45 = arith.cmpf ogt, %42, %44 : vector<4x16xf32>
    %46 = vector.broadcast %43 : vector<1x1xf32> to vector<4x16xf32>
    %47 = arith.mulf %42, %46 : vector<4x16xf32>
    %48 = arith.select %45, %42, %47 : vector<4x16xi1>, vector<4x16xf32>
    %c0_51 = arith.constant 0 : index
    %c0_52 = arith.constant 0 : index
    %49 = vector.load %arg7[%c0_51, %c0_52] : memref<4x16xf32, #tpu.memory_space<vmem>>, vector<4x16xf32>
    tpu.vector_store %arg7[%c0_51, %c0_52], %48 {strides = array<i32>} : memref<4x16xf32, #tpu.memory_space<vmem>>, vector<4x16xf32>,
    return
  }
}

</mosaic_0001>

<bundles_post_ra>
// kernel: forward.1
= control target key start
LH: loop header
LB: loop body
LE: loop exit
PB: predicated region body
PF: predicated region fallthrough
CT: control target
= control target key end

     0   :  { %vm34_vm0 = vcmask 261120   ;;  %vm255_vm1 = vcmask 1043456   ;;  %vm251_vm2 = vcmask 97280   ;;  %vm285_vm3 = vcmask 392192   ;;  %s799_s0 = inlined_call_operand.vmem [shape: f32[32,128], index: 0, kind: input, shape index: {}]   ;;  %s800_s2 = inlined_call_operand.vmem [shape: f32[3,128,48], index: 2, kind: input, shape index: {}]   ;;  %s801_s1 = inlined_call_operand.vmem [shape: f32[3,12,32], index: 1, kind: input, shape index: {}]   ;;  %s802_s4 = inlined_call_operand.vmem [shape: f32[3,48,16], index: 4, kind: input, shape index: {}]   ;;  %s803_s3 = inlined_call_operand.vmem [shape: f32[3,4,12], index: 3, kind: input, shape index: {}]   ;;  %s804_s6 = inlined_call_operand.<no memory space> [shape: f32[1,1], index: 6, kind: input, shape index: {}]   ;;  %s805_s5 = inlined_call_operand.vmem [shape: f32[4,16], index: 5, kind: input, shape index: {}]   ;;  %s806_s7 = inlined_call_operand.vmem [shape: f32[4,16], index: 7, kind: output, shape index: {}]  }
   0x1   :  { %v31_v0 = vld [vmem:[%s799_s0 + $0x18] sm:$0xff]  ;;  %v30_v1 = vld [vmem:[%s799_s0 + $0x10] sm:$0xff]  ;;  %v29_v2 = vld [vmem:[%s799_s0 + $0x8] sm:$0xff]  ;;  %vm432_vm5 = vcmask 125952  }
   0x2   :  { %53 = vmatpush.msra.mxu0 %v31_v0  ;;  %101 = vmatpush.msra.mxu1 %v31_v0  ;;  %v459_v3 = vld [vmem:[%s800_s2 + $0xf8] sm:$0xff]  ;;  %v28_v5 = vld [vmem:[%s799_s0] sm:$0xff]  ;;  %v458_v6 = vld [vmem:[%s800_s2 + $0xf0] sm:$0xff] }
   0x3   :  { %v79_v4 = vld [vmem:[%s800_s2 + $0x78] sm:$0xff]  ;;  %129 = vmatpush.msra.mxu2 %v459_v3  ;;  %v78_v7 = vld [vmem:[%s800_s2 + $0x70] sm:$0xff]  ;;  %v32_v8 = vld [vmem:[%s801_s1] sm:$0xff] }
   0x4   :  { %54 = vmatpush.msra.mxu0 %v30_v1  ;;  %102 = vmatpush.msra.mxu1 %v30_v1  ;;  %v440_v9 = vld [vmem:[%s801_s1 + $0x10] sm:$0xff]  ;;  %v457_v10 = vld [vmem:[%s800_s2 + $0xe8] sm:$0xff]  ;;  %v456_v12 = vld [vmem:[%s800_s2 + $0xe0] sm:$0xff] }
   0x5   :  { %152 = vmatpush.msra.mxu3 %v79_v4  ;;  %130 = vmatpush.msra.mxu2 %v458_v6  ;;  %v77_v11 = vld [vmem:[%s800_s2 + $0x68] sm:$0xff]  ;;  %v76_v13 = vld [vmem:[%s800_s2 + $0x60] sm:$0xff]  ;;  %v479_v14 = vld [vmem:[%s800_s2 + $0x178] sm:$0xff] }
   0x6   :  { %55 = vmatpush.msra.mxu0 %v29_v2  ;;  %103 = vmatpush.msra.mxu1 %v29_v2  ;;  %v455_v15 = vld [vmem:[%s800_s2 + $0xd8] sm:$0xff]  ;;  %v478_v16 = vld [vmem:[%s800_s2 + $0x170] sm:$0xff]  ;;  %v477_v18 = vld [vmem:[%s800_s2 + $0x168] sm:$0xff] }
   0x7   :  { %153 = vmatpush.msra.mxu3 %v78_v7  ;;  %131 = vmatpush.msra.mxu2 %v457_v10  ;;  %v75_v17 = vld [vmem:[%s800_s2 + $0x58] sm:$0xff]  ;;  %v454_v19 = vld [vmem:[%s800_s2 + $0xd0] sm:$0xff]  ;;  %v33_v20 = vld [vmem:[%s801_s1 + $0x8] sm:$0xf] }
   0x8   :  { %56 = vmatpush.msra.mxu0 %v28_v5  ;;  %104 = vmatpush.msra.mxu1 %v28_v5  ;;  %v441_v21 = vld [vmem:[%s801_s1 + $0x18] sm:$0xf]  ;;  %v74_v22 = vld [vmem:[%s800_s2 + $0x50] sm:$0xff]  ;;  %v453_v23 = vld [vmem:[%s800_s2 + $0xc8] sm:$0xff] }
   0x9   :  { %438 = vmatmul.msk.f32.vlgmr.msra.gmra.mxu0 %vm34_vm0, %v32_v8  ;;  %442 = vmatmul.msk.f32.vlgmr.msra.gmra.mxu1 %vm34_vm0, %v440_v9  ;;  %v476_v24 = vld [vmem:[%s800_s2 + $0x160] sm:$0xff]  ;;  %v73_v25 = vld [vmem:[%s800_s2 + $0x48] sm:$0xff]  ;;  %v475_v27 = vld [vmem:[%s800_s2 + $0x158] sm:$0xff] }
   0xa   :  { %196 = vmatpush.msrb.mxu0 %v31_v0  ;;  %154 = vmatpush.msra.mxu3 %v77_v11  ;;  %v452_v26 = vld [vmem:[%s800_s2 + $0xc0] sm:$0xff]  ;;  %v451_v29 = vld [vmem:[%s800_s2 + $0xb8] sm:$0xff]  ;;  %v474_v30 = vld [vmem:[%s800_s2 + $0x150] sm:$0xff] }
   0xb   :  { %224 = vmatpush.msrb.mxu1 %v479_v14  ;;  %132 = vmatpush.msra.mxu2 %v456_v12  ;;  %v72_v28 = vld [vmem:[%s800_s2 + $0x40] sm:$0xff]  ;;  %v71_v31 = vld [vmem:[%s800_s2 + $0x38] sm:$0xff]  ;;  %v450_v32 = vld [vmem:[%s800_s2 + $0xb0] sm:$0xff] }
   0xc   :  { %197 = vmatpush.msrb.mxu0 %v30_v1  ;;  %155 = vmatpush.msra.mxu3 %v76_v13  ;;  %v460_v33 = vld [vmem:[%s801_s1 + $0x20] sm:$0xff]  ;;  %v473_v34 = vld [vmem:[%s800_s2 + $0x148] sm:$0xff]  ;;  %v70_v35 = vld [vmem:[%s800_s2 + $0x30] sm:$0xff] }
   0xd   :  { %225 = vmatpush.msrb.mxu1 %v478_v16  ;;  %133 = vmatpush.msra.mxu2 %v455_v15  ;;  %v449_v36 = vld [vmem:[%s800_s2 + $0xa8] sm:$0xff]  ;;  %v448_v38 = vld [vmem:[%s800_s2 + $0xa0] sm:$0xff]  ;;  %v447_v40 = vld [vmem:[%s800_s2 + $0x98] sm:$0xff] }
   0xe   :  { %198 = vmatpush.msrb.mxu0 %v29_v2  ;;  %156 = vmatpush.msra.mxu3 %v75_v17  ;;  %v69_v37 = vld [vmem:[%s800_s2 + $0x28] sm:$0xff]  ;;  %v68_v39 = vld [vmem:[%s800_s2 + $0x20] sm:$0xff]  ;;  %v67_v41 = vld [vmem:[%s800_s2 + $0x18] sm:$0xff] }
   0xf   :  { %226 = vmatpush.msrb.mxu1 %v477_v18  ;;  %134 = vmatpush.msra.mxu2 %v454_v19  ;;  %v446_v42 = vld [vmem:[%s800_s2 + $0x90] sm:$0xff]  ;;  %v461_v43 = vld [vmem:[%s801_s1 + $0x28] sm:$0xf]  ;;  %v444_v47 = vld [vmem:[%s800_s2 + $0x80] sm:$0xff] }
  0x10   :  { %199 = vmatpush.msrb.mxu0 %v28_v5  ;;  %157 = vmatpush.msra.mxu3 %v74_v22  ;;  %v66_v44 = vld [vmem:[%s800_s2 + $0x10] sm:$0xff]  ;;  %v445_v45 = vld [vmem:[%s800_s2 + $0x88] sm:$0xff]  ;;  %v64_v48 = vld [vmem:[%s800_s2] sm:$0xff] }
  0x11   :  { %439 = vmatmul.msk.f32.gmra.mxu0 %vm34_vm0, %v33_v20  ;;  %443 = vmatmul.msk.f32.gmra.mxu1 %vm34_vm0, %v441_v21  ;;  %v65_v46 = vld [vmem:[%s800_s2 + $0x8] sm:$0xff]  ;;  %v472_v49 = vld [vmem:[%s800_s2 + $0x140] sm:$0xff]  ;;  %v471_v50 = vld [vmem:[%s800_s2 + $0x138] sm:$0xff] }
  0x12   :  { %135 = vmatpush.msra.mxu2 %v453_v23  ;;  %227 = vmatpush.msrb.mxu1 %v476_v24  ;;  %v470_v51 = vld [vmem:[%s800_s2 + $0x130] sm:$0xff]  ;;  %v469_v52 = vld [vmem:[%s800_s2 + $0x128] sm:$0xff]  ;;  %v468_v53 = vld [vmem:[%s800_s2 + $0x120] sm:$0xff] }
  0x13   :  { %158 = vmatpush.msra.mxu3 %v73_v25  ;;  %v467_v54 = vld [vmem:[%s800_s2 + $0x118] sm:$0xff]  ;;  %v466_v55 = vld [vmem:[%s800_s2 + $0x110] sm:$0xff]  ;;  %v465_v56 = vld [vmem:[%s800_s2 + $0x108] sm:$0xff] }
  0x14   :  { %136 = vmatpush.msra.mxu2 %v452_v26  ;;  %228 = vmatpush.msrb.mxu1 %v475_v27  ;;  %v464_v57 = vld [vmem:[%s800_s2 + $0x100] sm:$0xff]  ;;  %v284_v2 = vld [vmem:[%s802_s4 + $0x28] sm:$0xff]  ;;  %v491_v4 = vld [vmem:[%s802_s4 + $0x58] sm:$0xff] }
  0x15   :  { %159 = vmatpush.msra.mxu3 %v72_v28  ;;  %v283_v3 = vld [vmem:[%s802_s4 + $0x20] sm:$0xff]  ;;  %v493_v15 = vld [vmem:[%s803_s3 + $0x8] sm:$0xf]  ;;  %v282_v16 = vld [vmem:[%s802_s4 + $0x18] sm:$0xff] }
  0x16   :  { %137 = vmatpush.msra.mxu2 %v451_v29  ;;  %229 = vmatpush.msrb.mxu1 %v474_v30  ;;  %v250_v13 = vld [vmem:[%s803_s3] sm:$0xf]  ;;  %v483_v14 = vld [vmem:[%s803_s3 + $0x4] sm:$0xf]  ;;  %v281_v17 = vld [vmem:[%s802_s4 + $0x10] sm:$0xff] }
  0x17   :  { %160 = vmatpush.msra.mxu3 %v71_v31  ;;  %v280_v18 = vld [vmem:[%s802_s4 + $0x8] sm:$0xff]  ;;  %v490_v19 = vld [vmem:[%s802_s4 + $0x50] sm:$0xff]  ;;  %v279_v20 = vld [vmem:[%s802_s4] sm:$0xff]  ;;  %v12_v31 = vstv %s804_s6 }
  0x18   :  { %138 = vmatpush.msra.mxu2 %v450_v32  ;;  %230 = vmatpush.msrb.mxu1 %v473_v34  ;;  %v489_v21 = vld [vmem:[%s802_s4 + $0x48] sm:$0xff]  ;;  %v488_v22 = vld [vmem:[%s802_s4 + $0x40] sm:$0xff]  ;;  %v487_v24 = vld [vmem:[%s802_s4 + $0x38] sm:$0xff]  ;;  %v506_v32 = vmov 0   ;;  %13 = vst [vmem:[#allocation2] sm:$0x1] %v12_v31 }
  0x19   :  { %462 = vmatmul.msk.f32.vlgmr.msrb.gmra.mxu0 %vm34_vm0, %v460_v33  ;;  %161 = vmatpush.msra.mxu3 %v70_v35  ;;  %v501_v23 = vld [vmem:[%s802_s4 + $0x88] sm:$0xff]  ;;  %v486_v25 = vld [vmem:[%s802_s4 + $0x30] sm:$0xff]  ;;  %v500_v26 = vld [vmem:[%s802_s4 + $0x80] sm:$0xff] }
  0x1a   :  { %139 = vmatpush.msra.mxu2 %v449_v36  ;;  %231 = vmatpush.msrb.mxu1 %v472_v49  ;;  %v499_v27 = vld [vmem:[%s802_s4 + $0x78] sm:$0xff]  ;;  %v498_v28 = vld [vmem:[%s802_s4 + $0x70] sm:$0xff]  ;;  %v497_v29 = vld [vmem:[%s802_s4 + $0x68] sm:$0xff] }
  0x1b   :  { %162 = vmatpush.msra.mxu3 %v69_v37  ;;  %v496_v30 = vld [vmem:[%s802_s4 + $0x60] sm:$0xff]  ;;  %504 = vset.pattern.permute.xlu0 %v506_v32 }
  0x1c   :  { %140 = vmatpush.msra.mxu2 %v448_v38  ;;  %232 = vmatpush.msrb.mxu1 %v471_v50  ;;  %v249_v37 = vld [vmem:[%s805_s5] sm:$0xf] }
  0x1d   :  { %163 = vmatpush.msra.mxu3 %v68_v39 }
  0x1e   :  { %141 = vmatpush.msra.mxu2 %v447_v40  ;;  %233 = vmatpush.msrb.mxu1 %v470_v51 }
  0x1f   :  { %164 = vmatpush.msra.mxu3 %v67_v41  ;;  %v505_v33 = vld [vmem:[#allocation2] ss:$0 sm:$0xff] }
  0x20   :  { %142 = vmatpush.msra.mxu2 %v446_v42  ;;  %234 = vmatpush.msrb.mxu1 %v469_v52 }
  0x21   :  { %463 = vmatmul.msk.f32.gmra.mxu0 %vm34_vm0, %v461_v43  ;;  %165 = vmatpush.msra.mxu3 %v66_v44 }
  0x22   :  { %143 = vmatpush.msra.mxu2 %v445_v45  ;;  %235 = vmatpush.msrb.mxu1 %v468_v53 }
  0x23   :  { %166 = vmatpush.msra.mxu3 %v65_v46  ;;  %427 = vperm.xlu0 %504, %v505_v33  }
  0x24   :  { %144 = vmatpush.msra.mxu2 %v444_v47  ;;  %236 = vmatpush.msrb.mxu1 %v467_v54 }
  0x25   :  { %167 = vmatpush.msra.mxu3 %v64_v48 }
  0x26   :  { %237 = vmatpush.msrb.mxu1 %v466_v55  ;;  %299 = vmatpush.msrb.mxu2 %v284_v2 }
  0x27   :  { %355 = vmatpush.msrb.mxu3 %v491_v4 }
  0x28   :  { %238 = vmatpush.msrb.mxu1 %v465_v56  ;;  %300 = vmatpush.msrb.mxu2 %v283_v3 }
  0x29   :  { %356 = vmatpush.msrb.mxu3 %v490_v19 }
  0x2a   :  { %239 = vmatpush.msrb.mxu1 %v464_v57  ;;  %301 = vmatpush.msrb.mxu2 %v282_v16 }
  0x2b   :  { %357 = vmatpush.msrb.mxu3 %v489_v21 }
  0x2c   :  { %302 = vmatpush.msrb.mxu2 %v281_v17  ;;  %411 = vmatpush.msra.mxu1 %v501_v23 }
  0x2d   :  { %358 = vmatpush.msrb.mxu3 %v488_v22 }
  0x2e   :  { %303 = vmatpush.msrb.mxu2 %v280_v18  ;;  %412 = vmatpush.msra.mxu1 %v500_v26 }
  0x2f   :  { %359 = vmatpush.msrb.mxu3 %v487_v24 }
  0x30   :  { %304 = vmatpush.msrb.mxu2 %v279_v20  ;;  %413 = vmatpush.msra.mxu1 %v499_v27 }
  0x31   :  { %360 = vmatpush.msrb.mxu3 %v486_v25 }
  0x32   :  { %414 = vmatpush.msra.mxu1 %v498_v28 }
  0x34   :  { %415 = vmatpush.msra.mxu1 %v497_v29 }
  0x36   :  { %416 = vmatpush.msra.mxu1 %v496_v30 }
  0x86   :  { %v58_v58 = vpop.f32.mrf.mxu0  ;;  %v106_v59 = vpop.f32.mrf.mxu1 }
  0x87   :  { %145 = vmatmul.f32.vlgmr.msra.gmra.mxu2 %v106_v59  ;;  %168 = vmatmul.f32.vlgmr.msra.gmra.mxu3 %v58_v58 }
  0x8e   :  { %v61_v60 = vpop.f32.mrf.mxu0  ;;  %v109_v61 = vpop.f32.mrf.mxu1 }
  0x8f   :  { %148 = vmatmul.f32.gmra.mxu2 %v109_v61  ;;  %171 = vmatmul.f32.gmra.mxu3 %v61_v60 }
  0x95   :  { %v428_v43 = vpop.permute.xlu0 %427 }
  0x96   :  { %v201_v62 = vpop.f32.mrf.mxu0 }
  0x97   :  { %240 = vmatmul.f32.vlgmr.msrb.gmra.mxu1 %v201_v62 }
  0x9e   :  { %v204_v63 = vpop.f32.mrf.mxu0 }
  0x9f   :  { %243 = vmatmul.f32.gmra.mxu1 %v204_v63 }
 0x10a   :  { %v146_v0 = vpop.f32.mrf.mxu2  ;;  %v169_v1 = vpop.f32.mrf.mxu3 }
 0x10b   :  { %v170_v10 = vadd.f32 %v169_v1, %v146_v0 }
 0x112   :  { %v149_v6 = vpop.f32.mrf.mxu2  ;;  %v172_v7 = vpop.f32.mrf.mxu3 }
 0x113   :  { %v173_v8 = vadd.f32 %v172_v7, %v149_v6 }
 0x114   :  { %v241_v5 = vpop.f32.mrf.mxu1 }
 0x115   :  { %v247_v12 = vadd.f32 %v241_v5, %v170_v10 }
 0x11c   :  { %v244_v9 = vpop.f32.mrf.mxu1 }
 0x11d   :  { %v248_v11 = vadd.f32 %v244_v9, %v173_v8 }
 0x11f   :  { %480 = vmatpush.msk.msra.mxu0 %vm255_vm1, %v248_v11 }
 0x121   :  { %274 = vmatpush.msra.mxu0 %v247_v12 }
 0x122   :  { %481 = vmatmul.msk.f32.vlgmr.msra.gmra.mxu0 %vm251_vm2, %v250_v13 }
 0x123   :  { %484 = vmatpush.msk.msrb.mxu0 %vm255_vm1, %v248_v11 }
 0x125   :  { %330 = vmatpush.msrb.mxu0 %v247_v12 }
 0x127   :  { %494 = vmatpush.msk.msra.mxu0 %vm255_vm1, %v248_v11 }
 0x129   :  { %386 = vmatpush.msra.mxu0 %v247_v12 }
 0x12a   :  { %485 = vmatmul.msk.f32.vlgmr.msrb.gmra.mxu0 %vm251_vm2, %v483_v14 }
 0x132   :  { %495 = vmatmul.msk.f32.vlgmr.msra.gmra.mxu0 %vm251_vm2, %v493_v15 }
 0x19f   :  { %v276_v34 = vpop.f32.mrf.mxu0 }
 0x1a0   :  { %482 = vmatmul.msk.f32.vlgmr.msrb.gmra.mxu2 %vm285_vm3, %v276_v34 }
 0x1a7   :  { %v332_v35 = vpop.f32.mrf.mxu0 }
 0x1a8   :  { %492 = vmatmul.msk.f32.vlgmr.msrb.gmra.mxu3 %vm285_vm3, %v332_v35 }
 0x1af   :  { %v388_v36 = vpop.f32.mrf.mxu0 }
 0x1b0   :  { %502 = vmatmul.msk.f32.vlgmr.msra.gmra.mxu1 %vm285_vm3, %v388_v36 }
 0x223   :  { %v306_v38 = vpop.f32.mrf.mxu2 }
 0x224   :  { %v309_v39 = vadd.f32 %v306_v38, %v249_v37 }
 0x22b   :  { %v362_v40 = vpop.f32.mrf.mxu3 }
 0x22c   :  { %v365_v41 = vadd.f32 %v362_v40, %v309_v39 }
 0x22d   :  { %v418_v42 = vpop.f32.mrf.mxu1 }
 0x22e   :  { %v421_v44 = vadd.f32 %v418_v42, %v365_v41 }
 0x230   :  { %vm423_vm4 = vcmp.gt.f32.partialorder %v421_v44, 0.0  ;;  %v430_v45 = vmul.f32 %v428_v43, %v421_v44 }
 0x232   :  { %v431_v46 = vsel %vm423_vm4, %v421_v44, %v430_v45 }
 0x233   :  { %433 = vst.msk [vmem:[%s806_s7] sm:$0xf] %vm432_vm5, %v431_v46 }

</bundles_post_ra>
